<compile_context>
chip_gen: v5e
topology: v5e:2x2
jax: 0.10.0
libtpu: 0.0.40
codegen_flags: <defaults>
</compile_context>

<pallas_src>
import functools

import jax
import jax.numpy as jnp
from jax.experimental import pallas as pl
from jax.experimental.pallas import tpu as pltpu

BN_EPS = 1e-5
F_IN = 10
F_HID = 64


def _round_up(n, m):
    return ((n + m - 1) // m) * m


# -----------------------------------------------------------------------------
# In-kernel helpers
# -----------------------------------------------------------------------------
def _linear_relu(w_ref, b_ref, act):
    """relu(W @ act + b); W/act in compute dtype, f32 accumulation on the MXU."""
    h = jnp.dot(w_ref[...], act, preferred_element_type=jnp.float32)
    return jnp.maximum(h + b_ref[...], 0.0)


def _write_partial_stats(h, sum_ref, ssq_ref, valid_in_last):
    """Per-tile partial sum / sum-of-squares of h (features, TB).

    Padded batch columns exist only in the last tile; mask them there (and only
    there) with an in-kernel iota compare, so full tiles pay zero masking cost.
    """
    tb = h.shape[-1]

    def store(hm):
        sum_ref[...] = jnp.sum(hm, axis=1, keepdims=True)
        ssq_ref[...] = jnp.sum(hm * hm, axis=1, keepdims=True)

    if valid_in_last >= tb:                       # batch is a tile multiple
        store(h)
    else:
        last = pl.num_programs(0) - 1

        @pl.when(pl.program_id(0) != last)
        def _full_tile():
            store(h)

        @pl.when(pl.program_id(0) == last)
        def _partial_tile():
            lane = jax.lax.broadcasted_iota(jnp.int32, h.shape, 1)
            store(jnp.where(lane < valid_in_last, h, 0.0))


# -----------------------------------------------------------------------------
# Kernels
# -----------------------------------------------------------------------------
def _stats1_kernel(x_ref, w1_ref, b1_ref, sum_ref, ssq_ref, *, valid_in_last):
    h1 = _linear_relu(w1_ref, b1_ref, x_ref[...])                    # (64, TB)
    _write_partial_stats(h1, sum_ref, ssq_ref, valid_in_last)


def _stats2_kernel(x_ref, w1_ref, b1_ref, w2_ref, b2_ref, sum_ref, ssq_ref,
                   *, compute_dtype, valid_in_last):
    # Layer 1 recomputed (cheaper than round-tripping (64,B) through HBM);
    # BN1 is already folded into w2_ref/b2_ref.
    h1 = _linear_relu(w1_ref, b1_ref, x_ref[...])
    h2 = _linear_relu(w2_ref, b2_ref, h1.astype(compute_dtype))
    _write_partial_stats(h2, sum_ref, ssq_ref, valid_in_last)


def _forward_eval_kernel(x_ref, w1_ref, b1_ref, w2_ref, b2_ref, w3_ref, b3_ref,
                         out_ref, *, compute_dtype):
    # BN1 folded into (w2,b2); BN2 folded into (w3,b3); dropout is identity.
    h1 = _linear_relu(w1_ref, b1_ref, x_ref[...])
    h2 = _linear_relu(w2_ref, b2_ref, h1.astype(compute_dtype))
    out = jnp.dot(w3_ref[...], h2.astype(compute_dtype),
                  preferred_element_type=jnp.float32)
    out_ref[...] = out + b3_ref[...]                                 # (1, TB)


def _forward_train_kernel(x_ref, w1_ref, b1_ref, w2_ref, b2_ref, s2_ref, t2_ref,
                          keep_ref, w3_ref, b3_ref, out_ref,
                          *, compute_dtype, inv_keep):
    # Dropout sits between BN2 and Linear3, so BN2 stays an explicit FMA here.
    h1 = _linear_relu(w1_ref, b1_ref, x_ref[...])
    h2 = _linear_relu(w2_ref, b2_ref, h1.astype(compute_dtype))
    h2 = h2 * s2_ref[...] + t2_ref[...]                              # BN2 FMA
    h2 = jnp.where(keep_ref[...] > 0, h2 * inv_keep, 0.0)           # dropout
    out = jnp.dot(w3_ref[...], h2.astype(compute_dtype),
                  preferred_element_type=jnp.float32)
    out_ref[...] = out + b3_ref[...]


# -----------------------------------------------------------------------------
# Host-side helpers
# -----------------------------------------------------------------------------
def _bn_scale_shift(total, total_sq, n, gamma, beta):
    """Fold training-mode BN (batch mean, biased var) into scale/shift."""
    mean = total / n
    var = jnp.maximum(total_sq / n - mean * mean, 0.0)
    scale = gamma * jax.lax.rsqrt(var + BN_EPS)
    shift = beta - mean * scale
    return scale, shift


def _fold_bn_into_next(w_next, b_next, scale, shift, compute_dtype):
    """W @ (scale*h + shift) + b  ==  (W*scale^T) @ h + (W@shift + b)."""
    w_f = (w_next * scale.T).astype(compute_dtype)
    b_f = b_next + w_next @ shift
    return w_f, b_f


def _cost(flops, *arrays):
    nbytes = sum(int(a.size) * a.dtype.itemsize for a in arrays)
    return pl.CostEstimate(flops=int(flops), transcendentals=0,
                           bytes_accessed=int(nbytes))


def binary_classification_forward(x, params, *, training=False, dropout_rate=0.1,
                                  dropout_mask=None, dropout_seed=0,
                                  block_b=2048, compute_dtype=jnp.bfloat16):
    """x: (B, 10) float32. Returns (B, 1) float32 logits."""
    w1, b1, g1, be1, w2, b2, g2, be2, w3, b3 = params
    B = x.shape[0]
    f_in, f_h = w1.shape[1], w1.shape[0]
    f_in_pad = _round_up(f_in, 16)            # whole bf16 sublane group, aligned K

    # ---- batch tiling: TB >= 1024 (or whole padded batch), multiple of 256 ----
    tb = _round_up(max(int(block_b), 1024), 256)
    tb = min(tb, _round_up(max(B, 1), 256))
    b_pad = _round_up(max(B, 1), tb)
    n_tiles = b_pad // tb
    valid_in_last = B - (n_tiles - 1) * tb    # only the last tile can be partial
    grid = (n_tiles,)

    # Feature-major (lane-dense) layout; cast to bf16 BEFORE transpose/pad so the
    # host-side relayout writes half the bytes.
    x_t = jnp.pad(x.astype(compute_dtype).T,
                  ((0, f_in_pad - f_in), (0, b_pad - B)))            # (16, B_pad)
    w1c = jnp.pad(w1, ((0, 0), (0, f_in_pad - f_in))).astype(compute_dtype)

    def full(a):        # small operand, resident in VMEM across the whole grid
        return pl.BlockSpec(a.shape, lambda i: (0,) * a.ndim)

    def cols(rows):     # batch-tiled operand, double-buffered by the pipeline
        return pl.BlockSpec((rows, tb), lambda i: (0, i))

    # Per-tile partial-statistics outputs: each grid step owns its own block, so
    # the grid axis is fully parallel (v7x megacore splits it across both TCs).
    stat_spec = pl.BlockSpec((None, f_h, 1), lambda i: (i, 0, 0))
    stat_shape = (jax.ShapeDtypeStruct((n_tiles, f_h, 1), jnp.float32),) * 2
    parallel = pltpu.CompilerParams(dimension_semantics=("parallel",))

    # ---- pass 1: BN1 batch statistics ---------------------------------------
    p1_sum, p1_ssq = pl.pallas_call(
        functools.partial(_stats1_kernel, valid_in_last=valid_in_last),
        grid=grid,
        in_specs=[cols(f_in_pad), full(w1c), full(b1)],
        out_specs=(stat_spec, stat_spec),
        out_shape=stat_shape,
        compiler_params=parallel,
        cost_estimate=_cost(2 * b_pad * f_in_pad * f_h, x_t, w1c, b1),
    )(x_t, w1c, b1)
    scale1, shift1 = _bn_scale_shift(jnp.sum(p1_sum, axis=0),
                                     jnp.sum(p1_ssq, axis=0), B, g1, be1)
    w2f, b2f = _fold_bn_into_next(w2, b2, scale1, shift1, compute_dtype)

    # ---- pass 2: BN2 batch statistics (BN1 pre-folded into w2f/b2f) ----------
    p2_sum, p2_ssq = pl.pallas_call(
        functools.partial(_stats2_kernel, compute_dtype=compute_dtype,
                          valid_in_last=valid_in_last),
        grid=grid,
        in_specs=[cols(f_in_pad), full(w1c), full(b1), full(w2f), full(b2f)],
        out_specs=(stat_spec, stat_spec),
        out_shape=stat_shape,
        compiler_params=parallel,
        cost_estimate=_cost(2 * b_pad * f_h * (f_in_pad + f_h),
                            x_t, w1c, b1, w2f, b2f),
    )(x_t, w1c, b1, w2f, b2f)
    scale2, shift2 = _bn_scale_shift(jnp.sum(p2_sum, axis=0),
                                     jnp.sum(p2_ssq, axis=0), B, g2, be2)

    # ---- pass 3: fused forward, lane-dense (1, TB) output ---------------------
    out_spec = pl.BlockSpec((1, tb), lambda i: (0, i))
    out_shape = jax.ShapeDtypeStruct((1, b_pad), jnp.float32)
    apply_dropout = bool(training) and float(dropout_rate) > 0.0

    if not apply_dropout:
        # Eval / p=0: fold BN2 into the output layer as well.
        w3f, b3f = _fold_bn_into_next(w3, b3, scale2, shift2, compute_dtype)
        out_t = pl.pallas_call(
            functools.partial(_forward_eval_kernel, compute_dtype=compute_dtype),
            grid=grid,
            in_specs=[cols(f_in_pad), full(w1c), full(b1), full(w2f), full(b2f),
                      full(w3f), full(b3f)],
            out_specs=out_spec,
            out_shape=out_shape,
            compiler_params=parallel,
            cost_estimate=_cost(2 * b_pad * f_h * (f_in_pad + f_h + 1),
                                x_t, w1c, b1, w2f, b2f, w3f, b3f),
        )(x_t, w1c, b1, w2f, b2f, w3f, b3f)
    else:
        # Training: dropout keep-mask generated host-side (portable: the in-kernel
        # TPU PRNG has no interpret-mode lowering) and streamed per batch tile.
        if dropout_mask is None:
            dropout_mask = jax.random.bernoulli(
                jax.random.PRNGKey(dropout_seed), 1.0 - float(dropout_rate),
                (f_h, B))
        keep = jnp.pad(dropout_mask.astype(compute_dtype),
                       ((0, 0), (0, b_pad - B)))                     # (64, B_pad)
        w3c = w3.astype(compute_dtype)
        out_t = pl.pallas_call(
            functools.partial(_forward_train_kernel, compute_dtype=compute_dtype,
                              inv_keep=1.0 / (1.0 - float(dropout_rate))),
            grid=grid,
            in_specs=[cols(f_in_pad), full(w1c), full(b1), full(w2f), full(b2f),
                      full(scale2), full(shift2), cols(f_h), full(w3c), full(b3)],
            out_specs=out_spec,
            out_shape=out_shape,
            compiler_params=parallel,
            cost_estimate=_cost(2 * b_pad * f_h * (f_in_pad + f_h + 1),
                                x_t, w1c, b1, w2f, b2f, scale2, shift2,
                                keep, w3c, b3),
        )(x_t, w1c, b1, w2f, b2f, scale2, shift2, keep, w3c, b3)

    return out_t[:, :B].T                                            # (B, 1)


# -----------------------------------------------------------------------------
# Parameters & pure-JAX reference
# -----------------------------------------------------------------------------
def init_params(key):
    """torch defaults: Linear U(-1/sqrt(fan_in), +), BN gamma=1 / beta=0.
    Weights in PyTorch (out, in) layout; biases / BN params as (out, 1)."""
    def linear(k, fan_in, fan_out):
        kw, kb = jax.random.split(k)
        bound = 1.0 / (fan_in ** 0.5)
        w = jax.random.uniform(kw, (fan_out, fan_in), jnp.float32, -bound, bound)
        b = jax.random.uniform(kb, (fan_out, 1), jnp.float32, -bound, bound)
        return w, b

    k1, k2, k3 = jax.random.split(key, 3)
    w1, b1 = linear(k1, F_IN, F_HID)
    w2, b2 = linear(k2, F_HID, F_HID)
    w3, b3 = linear(k3, F_HID, 1)
    g1 = jnp.ones((F_HID, 1), jnp.float32)
    be1 = jnp.zeros((F_HID, 1), jnp.float32)
    g2 = jnp.ones((F_HID, 1), jnp.float32)
    be2 = jnp.zeros((F_HID, 1), jnp.float32)
    return (w1, b1, g1, be1, w2, b2, g2, be2, w3, b3)


def _reference_forward(x, params, *, training=False, dropout_rate=0.1,
                       dropout_mask=None, compute_dtype=jnp.bfloat16):
    """Pure-JAX reference mirroring the kernel math (train-mode BN statistics)."""
    w1, b1, g1, be1, w2, b2, g2, be2, w3, b3 = params
    n = x.shape[0]
    cd = compute_dtype
    xt = x.astype(cd).T
    h1 = jnp.maximum(jnp.dot(w1.astype(cd), xt,
                             preferred_element_type=jnp.float32) + b1, 0.0)
    sc1, sh1 = _bn_scale_shift(jnp.sum(h1, axis=1, keepdims=True),
                               jnp.sum(h1 * h1, axis=1, keepdims=True), n, g1, be1)
    w2f, b2f = _fold_bn_into_next(w2, b2, sc1, sh1, cd)
    h2 = jnp.maximum(jnp.dot(w2f, h1.astype(cd),
                             preferred_element_type=jnp.float32) + b2f, 0.0)
    sc2, sh2 = _bn_scale_shift(jnp.sum(h2, axis=1, keepdims=True),
                               jnp.sum(h2 * h2, axis=1, keepdims=True), n, g2, be2)
    if training and dropout_rate > 0.0:
        h2 = h2 * sc2 + sh2
        h2 = jnp.where(dropout_mask, h2 * (1.0 / (1.0 - dropout_rate)), 0.0)
        out = jnp.dot(w3.astype(cd), h2.astype(cd),
                      preferred_element_type=jnp.float32) + b3
    else:
        w3f, b3f = _fold_bn_into_next(w3, b3, sc2, sh2, cd)
        out = jnp.dot(w3f, h2.astype(cd),
                      preferred_element_type=jnp.float32) + b3f
    return out.T


# TODO(synk): BatchNorm running_mean / running_var buffers are never maintained;
# eval-mode torch semantics (running stats) would require carrying those buffers.

if __name__ == "__main__":
    key = jax.random.PRNGKey(0)
    k_params, k_x1, k_x2, k_drop = jax.random.split(key, 4)
    params = init_params(k_params)

    # 1) eval-mode forward, single batch tile, batch not a multiple of 128.
    x_small = jax.random.normal(k_x1, (300, F_IN), jnp.float32)
    out = jax.block_until_ready(binary_classification_forward(x_small, params))
    assert out.shape == (300, 1), out.shape
    ref = _reference_forward(x_small, params)
    err = float(jnp.max(jnp.abs(out - ref)))
    assert jnp.allclose(out, ref, atol=5e-3, rtol=5e-3), err

    # 2) eval-mode forward across multiple batch tiles (partial last tile),
    #    exercising the per-tile partial BN-statistics reduction.
    x_big = jax.random.normal(k_x2, (2600, F_IN), jnp.float32)
    out_big = jax.block_until_ready(binary_classification_forward(x_big, params))
    assert out_big.shape == (2600, 1), out_big.shape
    ref_big = _reference_forward(x_big, params)
    err_big = float(jnp.max(jnp.abs(out_big - ref_big)))
    assert jnp.allclose(out_big, ref_big, atol=5e-3, rtol=5e-3), err_big

    # 3) training-mode forward: dropout keep-mask generated host-side and shared
    #    with the reference, so the comparison is exact up to bf16 rounding.
    keep = jax.random.bernoulli(k_drop, 0.9, (F_HID, 300))
    out_tr = jax.block_until_ready(
        binary_classification_forward(x_small, params, training=True,
                                      dropout_rate=0.1, dropout_mask=keep))
    assert out_tr.shape == (300, 1), out_tr.shape
    ref_tr = _reference_forward(x_small, params, training=True, dropout_rate=0.1,
                                dropout_mask=keep)
    err_tr = float(jnp.max(jnp.abs(out_tr - ref_tr)))
    assert jnp.allclose(out_tr, ref_tr, atol=5e-3, rtol=5e-3), err_tr
    assert bool(jnp.all(jnp.isfinite(out_tr)))

    print("KERNEL_OK")
</pallas_src>

<mosaic_0001>
module attributes {stable_mosaic.version = 11 : i64} {
  func.func @_stats1_kernel(%arg0: i32, %arg1: memref<16x512xbf16, #tpu.memory_space<vmem>>, %arg2: memref<64x16xbf16, #tpu.memory_space<vmem>>, %arg3: memref<64x1xf32, #tpu.memory_space<vmem>>, %arg4: memref<1x64x1xf32, #tpu.memory_space<vmem>>, %arg5: memref<1x64x1xf32, #tpu.memory_space<vmem>>) attributes {dimension_semantics = [#tpu.dimension_semantics<parallel>], iteration_bounds = array<i64: 1>, scalar_prefetch = 0 : i64, scratch_operands = 0 : i64, tpu.core_type = #tpu.core_type<tc>, window_params = [{transform_indices = @transform_0, window_bounds = array<i64: 16, 512>}, {pipeline_mode = #tpu.pipeline_mode<synchronous>, transform_indices = @transform_1, window_bounds = array<i64: 64, 16>}, {pipeline_mode = #tpu.pipeline_mode<synchronous>, transform_indices = @transform_2, window_bounds = array<i64: 64, 1>}, {transform_indices = @transform_3, window_bounds = array<i64: 1, 64, 1>}, {transform_indices = @transform_4, window_bounds = array<i64: 1, 64, 1>}]} {
    %c0 = arith.constant 0 : index
    %c0_0 = arith.constant 0 : index
    %0 = vector.load %arg1[%c0, %c0_0] : memref<16x512xbf16, #tpu.memory_space<vmem>>, vector<16x512xbf16>
    %c0_1 = arith.constant 0 : index
    %c0_2 = arith.constant 0 : index
    %1 = vector.load %arg2[%c0_1, %c0_2] : memref<64x16xbf16, #tpu.memory_space<vmem>>, vector<64x16xbf16>
    %cst = arith.constant dense<0.000000e+00> : vector<64x512xf32>
    %2 = tpu.matmul %1, %0, %cst {dimension_numbers = #tpu.dot_dimension_numbers<[1], [0], [0], [1], [0, 0, 1, 1], [], []>} : vector<64x16xbf16>, vector<16x512xbf16>, vector<64x512xf32> -> vector<64x512xf32>
    %c0_3 = arith.constant 0 : index
    %c0_4 = arith.constant 0 : index
    %3 = vector.load %arg3[%c0_3, %c0_4] : memref<64x1xf32, #tpu.memory_space<vmem>>, vector<64x1xf32>
    %4 = vector.broadcast %3 : vector<64x1xf32> to vector<64x512xf32>
    %5 = arith.addf %2, %4 : vector<64x512xf32>
    %cst_5 = arith.constant 0.000000e+00 : f32
    %6 = vector.broadcast %cst_5 : f32 to vector<64x512xf32>
    %7 = arith.maximumf %5, %6 : vector<64x512xf32>
    %c0_i32 = arith.constant 0 : i32
    %8 = arith.cmpi ne, %arg0, %c0_i32 : i32
    %9 = arith.extui %8 : i1 to i32
    %c0_i32_6 = arith.constant 0 : i32
    %10 = arith.cmpi ne, %9, %c0_i32_6 : i32
    scf.if %10 {
      %cst_9 = arith.constant dense<0.000000e+00> : vector<64xf32>
      %14 = vector.multi_reduction <add>, %7, %cst_9 [1] : vector<64x512xf32> to vector<64xf32>
      %15 = vector.shape_cast %14 : vector<64xf32> to vector<64x1xf32>
      %c0_10 = arith.constant 0 : index
      %c0_11 = arith.constant 0 : index
      %c0_12 = arith.constant 0 : index
      %16 = vector.load %arg4[%c0_10, %c0_11, %c0_12] : memref<1x64x1xf32, #tpu.memory_space<vmem>>, vector<1x64x1xf32>
      %17 = vector.shape_cast %16 : vector<1x64x1xf32> to vector<64x1xf32>
      %18 = vector.shape_cast %15 : vector<64x1xf32> to vector<1x64x1xf32>
      tpu.vector_store %arg4[%c0_10, %c0_11, %c0_12], %18 {strides = array<i32>} : memref<1x64x1xf32, #tpu.memory_space<vmem>>, vector<1x64x1xf32>,
      %19 = arith.mulf %7, %7 : vector<64x512xf32>
      %cst_13 = arith.constant dense<0.000000e+00> : vector<64xf32>
      %20 = vector.multi_reduction <add>, %19, %cst_13 [1] : vector<64x512xf32> to vector<64xf32>
      %21 = vector.shape_cast %20 : vector<64xf32> to vector<64x1xf32>
      %c0_14 = arith.constant 0 : index
      %c0_15 = arith.constant 0 : index
      %c0_16 = arith.constant 0 : index
      %22 = vector.load %arg5[%c0_14, %c0_15, %c0_16] : memref<1x64x1xf32, #tpu.memory_space<vmem>>, vector<1x64x1xf32>
      %23 = vector.shape_cast %22 : vector<1x64x1xf32> to vector<64x1xf32>
      %24 = vector.shape_cast %21 : vector<64x1xf32> to vector<1x64x1xf32>
      tpu.vector_store %arg5[%c0_14, %c0_15, %c0_16], %24 {strides = array<i32>} : memref<1x64x1xf32, #tpu.memory_space<vmem>>, vector<1x64x1xf32>,
    } else {
    }
    %c0_i32_7 = arith.constant 0 : i32
    %11 = arith.cmpi eq, %arg0, %c0_i32_7 : i32
    %12 = arith.extui %11 : i1 to i32
    %c0_i32_8 = arith.constant 0 : i32
    %13 = arith.cmpi ne, %12, %c0_i32_8 : i32
    scf.if %13 {
      %14 = tpu.iota {dimensions = array<i32: 1>} : vector<64x512xi32>
      %c300_i32 = arith.constant 300 : i32
      %15 = vector.broadcast %c300_i32 : i32 to vector<64x512xi32>
      %16 = arith.cmpi slt, %14, %15 : vector<64x512xi32>
      %cst_9 = arith.constant 0.000000e+00 : f32
      %17 = vector.broadcast %cst_9 : f32 to vector<64x512xf32>
      %18 = arith.select %16, %7, %17 : vector<64x512xi1>, vector<64x512xf32>
      %cst_10 = arith.constant dense<0.000000e+00> : vector<64xf32>
      %19 = vector.multi_reduction <add>, %18, %cst_10 [1] : vector<64x512xf32> to vector<64xf32>
      %20 = vector.shape_cast %19 : vector<64xf32> to vector<64x1xf32>
      %c0_11 = arith.constant 0 : index
      %c0_12 = arith.constant 0 : index
      %c0_13 = arith.constant 0 : index
      %21 = vector.load %arg4[%c0_11, %c0_12, %c0_13] : memref<1x64x1xf32, #tpu.memory_space<vmem>>, vector<1x64x1xf32>
      %22 = vector.shape_cast %21 : vector<1x64x1xf32> to vector<64x1xf32>
      %23 = vector.shape_cast %20 : vector<64x1xf32> to vector<1x64x1xf32>
      tpu.vector_store %arg4[%c0_11, %c0_12, %c0_13], %23 {strides = array<i32>} : memref<1x64x1xf32, #tpu.memory_space<vmem>>, vector<1x64x1xf32>,
      %24 = arith.mulf %18, %18 : vector<64x512xf32>
      %cst_14 = arith.constant dense<0.000000e+00> : vector<64xf32>
      %25 = vector.multi_reduction <add>, %24, %cst_14 [1] : vector<64x512xf32> to vector<64xf32>
      %26 = vector.shape_cast %25 : vector<64xf32> to vector<64x1xf32>
      %c0_15 = arith.constant 0 : index
      %c0_16 = arith.constant 0 : index
      %c0_17 = arith.constant 0 : index
      %27 = vector.load %arg5[%c0_15, %c0_16, %c0_17] : memref<1x64x1xf32, #tpu.memory_space<vmem>>, vector<1x64x1xf32>
      %28 = vector.shape_cast %27 : vector<1x64x1xf32> to vector<64x1xf32>
      %29 = vector.shape_cast %26 : vector<64x1xf32> to vector<1x64x1xf32>
      tpu.vector_store %arg5[%c0_15, %c0_16, %c0_17], %29 {strides = array<i32>} : memref<1x64x1xf32, #tpu.memory_space<vmem>>, vector<1x64x1xf32>,
    } else {
    }
    return
  }
  func.func @transform_0(%arg0: i32) -> (i32, i32) {
    %c0_i32 = arith.constant 0 : i32
    %c0_i32_0 = arith.constant 0 : i32
    return %c0_i32, %arg0 : i32, i32
  }
  func.func @transform_1(%arg0: i32) -> (i32, i32) {
    %c0_i32 = arith.constant 0 : i32
    %c0_i32_0 = arith.constant 0 : i32
    %c0_i32_1 = arith.constant 0 : i32
    return %c0_i32, %c0_i32_0 : i32, i32
  }
  func.func @transform_2(%arg0: i32) -> (i32, i32) {
    %c0_i32 = arith.constant 0 : i32
    %c0_i32_0 = arith.constant 0 : i32
    %c0_i32_1 = arith.constant 0 : i32
    return %c0_i32, %c0_i32_0 : i32, i32
  }
  func.func @transform_3(%arg0: i32) -> (i32, i32, i32) {
    %c0_i32 = arith.constant 0 : i32
    %c0_i32_0 = arith.constant 0 : i32
    %c0_i32_1 = arith.constant 0 : i32
    return %arg0, %c0_i32, %c0_i32_0 : i32, i32, i32
  }
  func.func @transform_4(%arg0: i32) -> (i32, i32, i32) {
    %c0_i32 = arith.constant 0 : i32
    %c0_i32_0 = arith.constant 0 : i32
    %c0_i32_1 = arith.constant 0 : i32
    return %arg0, %c0_i32, %c0_i32_0 : i32, i32, i32
  }
}

</mosaic_0001>

<bundles_post_ra>
// kernel: tpu_custom_call.1
= control target key start
LH: loop header
LB: loop body
LE: loop exit
PB: predicated region body
PF: predicated region fallthrough
CT: control target
= control target key end

     0   :  { %v653_v3 = vmov 0   ;;  %vm117_vm0 = vcmask 130048   ;;  %v415_v26 = vlaneseq  ;;  %vm496_vm2 = vcmask 7168   ;;  %s838_s0 = inlined_call_operand.vmem [shape: bf16[16,512], index: 0, kind: input, shape index: {}]   ;;  %s839_s1 = inlined_call_operand.vmem [shape: bf16[64,16], index: 1, kind: input, shape index: {}]   ;;  %s840_s2 = inlined_call_operand.vmem [shape: f32[64,1], index: 2, kind: input, shape index: {}]   ;;  %s841_s3 = inlined_call_operand.vmem [shape: f32[1,64,1], index: 3, kind: output, shape index: {0}]   ;;  %s842_s4 = inlined_call_operand.vmem [shape: f32[1,64,1], index: 4, kind: output, shape index: {1}]  }
   0x1   :  { %v611_v0 = vld [vmem:[%s838_s0] sm:$0xf]  ;;  %v643_v1 = vld [vmem:[%s838_s0 + $0xc] sm:$0xf0]  ;;  %v641_v2 = vld [vmem:[%s838_s0 + $0x4] sm:$0xf]  ;;  %650 = vset.pattern.permute.xlu0 %v653_v3  ;;  %651 = vset.pattern.permute.xlu1 %v653_v3 }
   0x2   :  { %v612_v4 = vor.u32 %v643_v1, %v611_v0  ;;  %v613_v5 = vld [vmem:[%s838_s0 + $0x10] sm:$0xf0]  ;;  %v619_v6 = vld [vmem:[%s838_s0 + $0x8] sm:$0xf]  ;;  %v644_v7 = vld [vmem:[%s838_s0 + $0x14] sm:$0xf0]  ;;  %652 = vset.pattern.permute.xlu2 %v653_v3 }
   0x3   :  { %v616_v8 = vor.u32 %v641_v2, %v613_v5  ;;  %v620_v9 = vor.u32 %v644_v7, %v619_v6  ;;  %v645_v10 = vld [vmem:[%s839_s1] sm:$0xff]  ;;  %v31_v12 = vld [vmem:[%s840_s2 + $0x10] sm:$0xff]  ;;  %v30_v13 = vld [vmem:[%s840_s2 + $0x8] sm:$0xff]  ;;  %v416_v30 = vand.u32 127, %v415_v26 }
   0x4   :  { %v29_v11 = vld [vmem:[%s840_s2] sm:$0xff]  ;;  %137 = vmatpush.bf16.msra.mxu0 %v612_v4  ;;  %49 = vperm.xlu1 %651, %v31_v12   ;;  %v32_v14 = vld [vmem:[%s840_s2 + $0x18] sm:$0xff]  ;;  %v35_v15 = vld [vmem:[%s840_s2 + $0x30] sm:$0xff] }
   0x5   :  { %39 = vperm.xlu0 %650, %v29_v11   ;;  %166 = vmatpush.bf16.msra.mxu1 %v616_v8  ;;  %v646_v16 = vld [vmem:[%s839_s1 + $0x8] sm:$0xff]  ;;  %v36_v17 = vld [vmem:[%s840_s2 + $0x38] sm:$0xff]  ;;  %v33_v18 = vld [vmem:[%s840_s2 + $0x20] sm:$0xff]  ;;  %v755_v34 = vadd.s32 256, %v416_v30 }
   0x6   :  { %195 = vmatpush.bf16.msra.mxu2 %v620_v9  ;;  %v642_v19 = vld [vmem:[%s838_s0 + $0xc] sm:$0xf]  ;;  %59 = vperm.xlu2 %652, %v33_v18   ;;  %v621_v20 = vld [vmem:[%s838_s0 + $0x18] sm:$0xf0]  ;;  %v647_v23 = vld [vmem:[%s839_s1 + $0x10] sm:$0xff] }
   0x7   :  { %625 = vmatmul.msk.bf16.vlgmr.msra.gmra.mxu0 %vm117_vm0, %v645_v10  ;;  %v624_v21 = vor.u32 %v642_v19, %v621_v20  ;;  %v34_v22 = vld [vmem:[%s840_s2 + $0x28] sm:$0xff]  ;;  %v648_v24 = vld [vmem:[%s839_s1 + $0x18] sm:$0xff]  ;;  %vm422_vm1 = vcmp.lt.s32.totalorder %v755_v34, 300 }
   0x8   :  { %629 = vmatmul.msk.bf16.vlgmr.msra.gmra.mxu1 %vm117_vm0, %v645_v10 }
   0x9   :  { %633 = vmatmul.msk.bf16.vlgmr.msra.gmra.mxu2 %vm117_vm0, %v645_v10  ;;  %224 = vmatpush.bf16.msra.mxu3 %v624_v21 }
   0xc   :  { %54 = vperm.xlu1 %651, %v32_v14   ;;  %637 = vmatmul.msk.bf16.vlgmr.msra.gmra.mxu3 %vm117_vm0, %v645_v10 }
   0xd   :  { %44 = vperm.xlu0 %650, %v30_v13  }
   0xe   :  { %64 = vperm.xlu2 %652, %v34_v22  }
  0x14   :  { %74 = vperm.xlu1 %651, %v36_v17  }
  0x15   :  { %69 = vperm.xlu0 %650, %v35_v15  }
  0x17   :  { %626 = vmatmul.msk.bf16.gmra.mxu0 %vm117_vm0, %v646_v16 }
  0x18   :  { %630 = vmatmul.msk.bf16.gmra.mxu1 %vm117_vm0, %v646_v16 }
  0x19   :  { %634 = vmatmul.msk.bf16.gmra.mxu2 %vm117_vm0, %v646_v16 }
  0x1c   :  { %638 = vmatmul.msk.bf16.gmra.mxu3 %vm117_vm0, %v646_v16 }
  0x27   :  { %627 = vmatmul.msk.bf16.gmra.mxu0 %vm117_vm0, %v647_v23 }
  0x28   :  { %631 = vmatmul.msk.bf16.gmra.mxu1 %vm117_vm0, %v647_v23 }
  0x29   :  { %635 = vmatmul.msk.bf16.gmra.mxu2 %vm117_vm0, %v647_v23 }
  0x2c   :  { %639 = vmatmul.msk.bf16.gmra.mxu3 %vm117_vm0, %v647_v23 }
  0x37   :  { %628 = vmatmul.msk.bf16.gmra.mxu0 %vm117_vm0, %v648_v24 }
  0x38   :  { %632 = vmatmul.msk.bf16.gmra.mxu1 %vm117_vm0, %v648_v24 }
  0x39   :  { %636 = vmatmul.msk.bf16.gmra.mxu2 %vm117_vm0, %v648_v24 }
  0x3c   :  { %640 = vmatmul.msk.bf16.gmra.mxu3 %vm117_vm0, %v648_v24 }
  0x60   :  { %v60_v23 = vpop.permute.xlu2 %59 }
  0x76   :  { %v50_v48 = vpop.permute.xlu1 %49 }
  0x77   :  { %v40_v25 = vpop.permute.xlu0 %39 }
  0x7e   :  { %v55_v5 = vpop.permute.xlu1 %54 }
  0x7f   :  { %v45_v35 = vpop.permute.xlu0 %44 }
  0x84   :  { %v139_v27 = vpop.f32.mrf.mxu0 }
  0x85   :  { %v140_v28 = vadd.f32 %v139_v27, %v40_v25  ;;  %v168_v29 = vpop.f32.mrf.mxu1 }
  0x86   :  { %v169_v31 = vadd.f32 %v168_v29, %v40_v25 }
  0x87   :  { %v246_v32 = vmax.f32 %v140_v28, 0.0 }
  0x88   :  { %v247_v33 = vmax.f32 %v169_v31, 0.0 }
  0x89   :  { %v505_v36 = vmul.f32 %v246_v32, %v246_v32 }
  0x8a   :  { %v506_v37 = vmul.f32 %v247_v33, %v247_v33  ;;  %v456_v41 = vadd.f32 %v247_v33, %v246_v32 }
  0x8c   :  { %v197_v38 = vpop.f32.mrf.mxu2  ;;  %v141_v40 = vpop.f32.mrf.mxu0  ;;  %v537_v46 = vadd.f32 %v506_v37, %v505_v36 }
  0x8d   :  { %v198_v39 = vadd.f32 %v197_v38, %v40_v25  ;;  %v142_v42 = vadd.f32 %v141_v40, %v45_v35  ;;  %v170_v43 = vpop.f32.mrf.mxu1 }
  0x8e   :  { %v171_v45 = vadd.f32 %v170_v43, %v45_v35 }
  0x8f   :  { %v248_v44 = vmax.f32 %v198_v39, 0.0  ;;  %v250_v49 = vmax.f32 %v142_v42, 0.0  ;;  %v226_v24 = vpop.f32.mrf.mxu3 }
  0x90   :  { %v251_v50 = vmax.f32 %v171_v45, 0.0 }
  0x91   :  { %v426_v47 = vsel %vm422_vm1, %v248_v44, 0.0  ;;  %v509_v57 = vmul.f32 %v250_v49, %v250_v49 }
  0x92   :  { %v457_v51 = vadd.f32 %v456_v41, %v426_v47  ;;  %v507_v52 = vmul.f32 %v426_v47, %v426_v47  ;;  %v510_v58 = vmul.f32 %v251_v50, %v251_v50  ;;  %v461_v2 = vadd.f32 %v251_v50, %v250_v49  ;;  %v65_v50 = vpop.permute.xlu2 %64 }
  0x94   :  { %v199_v53 = vpop.f32.mrf.mxu2  ;;  %459 = vadd.xlane.f32.xlu2 %v457_v51  ;;  %v538_v54 = vadd.f32 %v537_v46, %v507_v52  ;;  %v144_v56 = vpop.f32.mrf.mxu0  ;;  %v542_v4 = vadd.f32 %v510_v58, %v509_v57 }
  0x95   :  { %v200_v55 = vadd.f32 %v199_v53, %v45_v35  ;;  %v145_v59 = vadd.f32 %v144_v56, %v50_v48  ;;  %v173_v60 = vpop.f32.mrf.mxu1 }
  0x96   :  { %540 = vadd.xlane.f32.xlu0 %v538_v54  ;;  %v174_v62 = vadd.f32 %v173_v60, %v50_v48 }
  0x97   :  { %v252_v61 = vmax.f32 %v200_v55, 0.0  ;;  %v254_v63 = vmax.f32 %v145_v59, 0.0  ;;  %v228_v43 = vpop.f32.mrf.mxu3 }
  0x98   :  { %v255_v1 = vmax.f32 %v174_v62, 0.0 }
  0x99   :  { %v430_v0 = vsel %vm422_vm1, %v252_v61, 0.0  ;;  %v513_v6 = vmul.f32 %v254_v63, %v254_v63 }
  0x9a   :  { %v511_v3 = vmul.f32 %v430_v0, %v430_v0  ;;  %v514_v7 = vmul.f32 %v255_v1, %v255_v1  ;;  %v462_v10 = vadd.f32 %v461_v2, %v430_v0  ;;  %v466_v17 = vadd.f32 %v255_v1, %v254_v63  ;;  %v70_v2 = vpop.permute.xlu0 %69 }
  0x9c   :  { %v202_v8 = vpop.f32.mrf.mxu2  ;;  %v543_v9 = vadd.f32 %v542_v4, %v511_v3  ;;  %v146_v12 = vpop.f32.mrf.mxu0  ;;  %v547_v18 = vadd.f32 %v514_v7, %v513_v6 }
  0x9d   :  { %v203_v11 = vadd.f32 %v202_v8, %v50_v48  ;;  %v147_v13 = vadd.f32 %v146_v12, %v55_v5  ;;  %v175_v14 = vpop.f32.mrf.mxu1 }
  0x9e   :  { %545 = vadd.xlane.f32.xlu1 %v543_v9  ;;  %464 = vadd.xlane.f32.xlu0 %v462_v10  ;;  %v176_v16 = vadd.f32 %v175_v14, %v55_v5 }
  0x9f   :  { %v256_v15 = vmax.f32 %v203_v11, 0.0  ;;  %v258_v20 = vmax.f32 %v147_v13, 0.0  ;;  %v231_v60 = vpop.f32.mrf.mxu3 }
  0xa0   :  { %v259_v21 = vmax.f32 %v176_v16, 0.0  ;;  %v75_v16 = vpop.permute.xlu1 %74 }
  0xa1   :  { %v434_v19 = vsel %vm422_vm1, %v256_v15, 0.0  ;;  %v517_v30 = vmul.f32 %v258_v20, %v258_v20 }
  0xa2   :  { %v515_v22 = vmul.f32 %v434_v19, %v434_v19  ;;  %v467_v26 = vadd.f32 %v466_v17, %v434_v19  ;;  %v518_v31 = vmul.f32 %v259_v21, %v259_v21  ;;  %v471_v40 = vadd.f32 %v259_v21, %v258_v20 }
  0xa4   :  { %v204_v25 = vpop.f32.mrf.mxu2  ;;  %v548_v27 = vadd.f32 %v547_v18, %v515_v22  ;;  %v149_v29 = vpop.f32.mrf.mxu0  ;;  %v552_v42 = vadd.f32 %v518_v31, %v517_v30 }
  0xa5   :  { %v205_v28 = vadd.f32 %v204_v25, %v55_v5  ;;  %v150_v32 = vadd.f32 %v149_v29, %v60_v23  ;;  %v178_v33 = vpop.f32.mrf.mxu1 }
  0xa6   :  { %469 = vadd.xlane.f32.xlu1 %v467_v26  ;;  %550 = vadd.xlane.f32.xlu2 %v548_v27  ;;  %v179_v36 = vadd.f32 %v178_v33, %v60_v23 }
  0xa7   :  { %v260_v35 = vmax.f32 %v205_v28, 0.0  ;;  %v262_v37 = vmax.f32 %v150_v32, 0.0  ;;  %v233_v14 = vpop.f32.mrf.mxu3 }
  0xa8   :  { %v263_v39 = vmax.f32 %v179_v36, 0.0 }
  0xa9   :  { %v438_v38 = vsel %vm422_vm1, %v260_v35, 0.0  ;;  %v521_v44 = vmul.f32 %v262_v37, %v262_v37 }
  0xaa   :  { %v519_v41 = vmul.f32 %v438_v38, %v438_v38  ;;  %v522_v45 = vmul.f32 %v263_v39, %v263_v39  ;;  %v472_v48 = vadd.f32 %v471_v40, %v438_v38  ;;  %v476_v54 = vadd.f32 %v263_v39, %v262_v37 }
  0xac   :  { %v207_v46 = vpop.f32.mrf.mxu2  ;;  %v553_v47 = vadd.f32 %v552_v42, %v519_v41  ;;  %v151_v51 = vpop.f32.mrf.mxu0  ;;  %v557_v57 = vadd.f32 %v522_v45, %v521_v44 }
  0xad   :  { %v208_v49 = vadd.f32 %v207_v46, %v60_v23  ;;  %v180_v52 = vpop.f32.mrf.mxu1  ;;  %v152_v55 = vadd.f32 %v151_v51, %v65_v50 }
  0xae   :  { %555 = vadd.xlane.f32.xlu0 %v553_v47  ;;  %474 = vadd.xlane.f32.xlu2 %v472_v48  ;;  %v181_v56 = vadd.f32 %v180_v52, %v65_v50 }
  0xaf   :  { %v264_v53 = vmax.f32 %v208_v49, 0.0  ;;  %v266_v61 = vmax.f32 %v152_v55, 0.0  ;;  %v236_v32 = vpop.f32.mrf.mxu3 }
  0xb0   :  { %v267_v62 = vmax.f32 %v181_v56, 0.0 }
  0xb1   :  { %v442_v58 = vsel %vm422_vm1, %v264_v53, 0.0  ;;  %v525_v46 = vmul.f32 %v266_v61, %v266_v61 }
  0xb2   :  { %v523_v59 = vmul.f32 %v442_v58, %v442_v58  ;;  %v477_v1 = vadd.f32 %v476_v54, %v442_v58  ;;  %v481_v9 = vadd.f32 %v267_v62, %v266_v61  ;;  %v526_v47 = vmul.f32 %v267_v62, %v267_v62 }
  0xb4   :  { %v209_v63 = vpop.f32.mrf.mxu2  ;;  %v558_v0 = vadd.f32 %v557_v57, %v523_v59  ;;  %v154_v4 = vpop.f32.mrf.mxu0 }
  0xb5   :  { %v210_v3 = vadd.f32 %v209_v63, %v65_v50  ;;  %v155_v5 = vadd.f32 %v154_v4, %v70_v2  ;;  %v183_v6 = vpop.f32.mrf.mxu1  ;;  %v562_v50 = vadd.f32 %v526_v47, %v525_v46 }
  0xb6   :  { %560 = vadd.xlane.f32.xlu1 %v558_v0  ;;  %479 = vadd.xlane.f32.xlu2 %v477_v1  ;;  %v184_v8 = vadd.f32 %v183_v6, %v70_v2 }
  0xb7   :  { %v268_v7 = vmax.f32 %v210_v3, 0.0  ;;  %v270_v10 = vmax.f32 %v155_v5, 0.0  ;;  %v238_v45 = vpop.f32.mrf.mxu3 }
  0xb8   :  { %v271_v11 = vmax.f32 %v184_v8, 0.0 }
  0xb9   :  { %v446_v12 = vsel %vm422_vm1, %v268_v7, 0.0  ;;  %v529_v17 = vmul.f32 %v270_v10, %v270_v10 }
  0xba   :  { %v482_v13 = vadd.f32 %v481_v9, %v446_v12  ;;  %v530_v18 = vmul.f32 %v271_v11, %v271_v11  ;;  %v486_v25 = vadd.f32 %v271_v11, %v270_v10  ;;  %v527_v49 = vmul.f32 %v446_v12, %v446_v12 }
  0xbc   :  { %v212_v15 = vpop.f32.mrf.mxu2  ;;  %484 = vadd.xlane.f32.xlu0 %v482_v13  ;;  %v156_v20 = vpop.f32.mrf.mxu0  ;;  %v567_v27 = vadd.f32 %v530_v18, %v529_v17  ;;  %v563_v51 = vadd.f32 %v562_v50, %v527_v49 }
  0xbd   :  { %v213_v19 = vadd.f32 %v212_v15, %v70_v2  ;;  %v157_v21 = vadd.f32 %v156_v20, %v75_v16  ;;  %v185_v22 = vpop.f32.mrf.mxu1 }
  0xbe   :  { %v186_v24 = vadd.f32 %v185_v22, %v75_v16 }
  0xbf   :  { %v272_v23 = vmax.f32 %v213_v19, 0.0  ;;  %v274_v28 = vmax.f32 %v157_v21, 0.0  ;;  %v241_v52 = vpop.f32.mrf.mxu3 }
  0xc0   :  { %v275_v29 = vmax.f32 %v186_v24, 0.0 }
  0xc1   :  { %v450_v26 = vsel %vm422_vm1, %v272_v23, 0.0  ;;  %v533_v37 = vmul.f32 %v274_v28, %v274_v28 }
  0xc2   :  { %v487_v30 = vadd.f32 %v486_v25, %v450_v26  ;;  %v531_v31 = vmul.f32 %v450_v26, %v450_v26  ;;  %v534_v38 = vmul.f32 %v275_v29, %v275_v29  ;;  %v491_v40 = vadd.f32 %v275_v29, %v274_v28 }
  0xc4   :  { %v214_v33 = vpop.f32.mrf.mxu2  ;;  %489 = vadd.xlane.f32.xlu1 %v487_v30  ;;  %v568_v35 = vadd.f32 %v567_v27, %v531_v31  ;;  %v572_v44 = vadd.f32 %v534_v38, %v533_v37 }
  0xc5   :  { %v215_v36 = vadd.f32 %v214_v33, %v75_v16 }
  0xc6   :  { %570 = vadd.xlane.f32.xlu0 %v568_v35 }
  0xc7   :  { %v276_v39 = vmax.f32 %v215_v36, 0.0  ;;  %v243_v53 = vpop.f32.mrf.mxu3 }
  0xc9   :  { %v454_v41 = vsel %vm422_vm1, %v276_v39, 0.0 }
  0xca   :  { %v492_v42 = vadd.f32 %v491_v40, %v454_v41  ;;  %v535_v43 = vmul.f32 %v454_v41, %v454_v41 }
  0xcc   :  { %494 = vadd.xlane.f32.xlu2 %v492_v42  ;;  %v573_v48 = vadd.f32 %v572_v44, %v535_v43 }
  0xce   :  { %575 = vadd.xlane.f32.xlu1 %v573_v48 }
  0xd4   :  { %565 = vadd.xlane.f32.xlu2 %v563_v51 }
 0x107   :  { %v460_v54 = vpop.xlane.xlu2 %459 }
 0x108   :  { %497 = vst.msk [vmem:[%s841_s3] sm:$0xff] %vm496_vm2, %v460_v54 }
 0x109   :  { %v541_v34 = vpop.xlane.xlu0 %540 }
 0x10a   :  { %577 = vst.msk [vmem:[%s842_s4] sm:$0xff] %vm496_vm2, %v541_v34 }
 0x111   :  { %v546_v55 = vpop.xlane.xlu1 %545  ;;  %v465_v56 = vpop.xlane.xlu0 %464 }
 0x112   :  { %578 = vst.msk [vmem:[%s842_s4 + $0x8] sm:$0xff] %vm496_vm2, %v546_v55 }
 0x113   :  { %498 = vst.msk [vmem:[%s841_s3 + $0x8] sm:$0xff] %vm496_vm2, %v465_v56 }
 0x119   :  { %v470_v57 = vpop.xlane.xlu1 %469  ;;  %v551_v58 = vpop.xlane.xlu2 %550 }
 0x11a   :  { %499 = vst.msk [vmem:[%s841_s3 + $0x10] sm:$0xff] %vm496_vm2, %v470_v57 }
 0x11b   :  { %579 = vst.msk [vmem:[%s842_s4 + $0x10] sm:$0xff] %vm496_vm2, %v551_v58 }
 0x121   :  { %v556_v59 = vpop.xlane.xlu0 %555  ;;  %v475_v60 = vpop.xlane.xlu2 %474 }
 0x122   :  { %580 = vst.msk [vmem:[%s842_s4 + $0x18] sm:$0xff] %vm496_vm2, %v556_v59 }
 0x123   :  { %500 = vst.msk [vmem:[%s841_s3 + $0x18] sm:$0xff] %vm496_vm2, %v475_v60 }
 0x129   :  { %v561_v61 = vpop.xlane.xlu1 %560  ;;  %v480_v62 = vpop.xlane.xlu2 %479 }
 0x12a   :  { %581 = vst.msk [vmem:[%s842_s4 + $0x20] sm:$0xff] %vm496_vm2, %v561_v61 }
 0x12b   :  { %501 = vst.msk [vmem:[%s841_s3 + $0x20] sm:$0xff] %vm496_vm2, %v480_v62 }
 0x12f   :  { %v485_v63 = vpop.xlane.xlu0 %484 }
 0x130   :  { %502 = vst.msk [vmem:[%s841_s3 + $0x28] sm:$0xff] %vm496_vm2, %v485_v63 }
 0x137   :  { %v490_v0 = vpop.xlane.xlu1 %489 }
 0x138   :  { %503 = vst.msk [vmem:[%s841_s3 + $0x30] sm:$0xff] %vm496_vm2, %v490_v0 }
 0x139   :  { %v571_v1 = vpop.xlane.xlu0 %570 }
 0x13a   :  { %583 = vst.msk [vmem:[%s842_s4 + $0x30] sm:$0xff] %vm496_vm2, %v571_v1 }
 0x13f   :  { %v495_v2 = vpop.xlane.xlu2 %494 }
 0x140   :  { %504 = vst.msk [vmem:[%s841_s3 + $0x38] sm:$0xff] %vm496_vm2, %v495_v2 }
 0x141   :  { %v576_v3 = vpop.xlane.xlu1 %575 }
 0x142   :  { %584 = vst.msk [vmem:[%s842_s4 + $0x38] sm:$0xff] %vm496_vm2, %v576_v3 }
 0x147   :  { %v566_v4 = vpop.xlane.xlu2 %565 }
 0x148   :  { %582 = vst.msk [vmem:[%s842_s4 + $0x28] sm:$0xff] %vm496_vm2, %v566_v4 }

</bundles_post_ra>
